<compile_context>
chip_gen: v5e
topology: v5e:2x2
jax: 0.10.0
libtpu: 0.0.40
codegen_flags: <defaults>
</compile_context>

<pallas_src>
from functools import partial

import jax
import jax.numpy as jnp
from jax.experimental import pallas as pl
from jax.experimental.pallas import tpu as pltpu


def _counts_kernel(*refs, clr, proportion, log_transform, standardize,
                   normalize, feat):
    # refs = (x_ref, [minmax_smem_ref,] out_ref)
    x_ref = refs[0]
    o_ref = refs[-1]
    mm_ref = refs[1] if len(refs) == 3 else None

    x = x_ref[...].astype(jnp.float32)

    if clr:
        log_x = jnp.log(x + 1e-32)
        y = log_x - jnp.mean(log_x, axis=-1, keepdims=True)
    elif proportion:
        denom = jnp.sum(x, axis=-1, keepdims=True) + 1e-32
        inv = 1.0 / denom                      # per-row reciprocal on (rows, 1)
        y = x * inv                            # broadcast multiply, no full-block divide
    else:
        y = x
        if log_transform:
            y = jnp.log(x + 1e-32)
        if standardize:
            mean = jnp.mean(y, axis=-1, keepdims=True)
            centered = y - mean
            # torch.std default is unbiased (ddof=1). feat==1 -> 0/0 = NaN, like torch.
            var = jnp.sum(centered * centered, axis=-1, keepdims=True) / jnp.float32(feat - 1)
            inv_std = 1.0 / (jnp.sqrt(var) + 1e-32)   # per-row reciprocal
            y = centered * inv_std
        if normalize:
            x_min = mm_ref[0, 0]
            inv_range = mm_ref[0, 1]           # 1/(max-min) precomputed in the wrapper
            y = (y - x_min) * inv_range

    o_ref[...] = y.astype(o_ref.dtype)


def _pick_row_tile(n_rows, feat):
    """Largest power-of-two row tile whose f32 working set fits ~2 MiB.

    2 MiB/block keeps (2x input bufs + 2x output bufs + in-kernel f32 copies)
    well under v5e's 16 MiB default scoped VMEM and v7x's 64 MiB physical VMEM.
    """
    budget = 2 * 1024 * 1024
    tile = 8
    for t in (1024, 512, 256, 128, 64, 32, 16, 8):
        if t * feat * 4 <= budget:
            tile = t
            break
    # v7x megacore: keep the row grid at >= 4 steps so both TensorCores get work.
    while pl.cdiv(n_rows, tile) < 4 and tile > 8:
        tile //= 2
    return tile


@partial(jax.jit, static_argnames=("clr", "proportion", "log_transform",
                                   "standardize", "normalize"))
def counts_preprocessing(X, *, clr, proportion, log_transform, standardize,
                         normalize):
    orig_shape = X.shape
    orig_dtype = X.dtype
    feat = orig_shape[-1]
    x2 = X.reshape(-1, feat)
    n_rows = x2.shape[0]

    any_transform = clr or proportion or log_transform or standardize or normalize
    # torch promotes integer inputs to float for these ops; float inputs keep dtype.
    if any_transform and not jnp.issubdtype(orig_dtype, jnp.floating):
        out_dtype = jnp.float32
    else:
        out_dtype = orig_dtype

    row_tile = _pick_row_tile(n_rows, feat)
    grid = (pl.cdiv(n_rows, row_tile),)        # ragged grid: no divisibility needed

    need_minmax = normalize and (not proportion) and (not clr)

    kernel = partial(
        _counts_kernel,
        clr=clr, proportion=proportion, log_transform=log_transform,
        standardize=standardize, normalize=normalize, feat=feat,
    )

    # Feature dim = full array extent; legal even if not a 128 multiple.
    # TODO(synk): for feat not 128-aligned, pad+mask to avoid masked vst penalty.
    in_specs = [pl.BlockSpec((row_tile, feat), lambda i: (i, 0))]
    args = [x2]
    if need_minmax:
        # Global min / 1/(max-min) of the ORIGINAL X, computed once inside this jit
        # (fuses into one HBM pass) and passed as SMEM scalars.
        x_min = jnp.min(x2).astype(jnp.float32)
        x_max = jnp.max(x2).astype(jnp.float32)
        inv_range = 1.0 / (x_max - x_min)
        minmax = jnp.stack([x_min, inv_range]).reshape(1, 2)
        in_specs.append(pl.BlockSpec(memory_space=pltpu.MemorySpace.SMEM))
        args.append(minmax)

    # Advisory cost estimate so XLA schedules around the custom call.
    in_itemsize = jnp.dtype(orig_dtype).itemsize
    out_itemsize = jnp.dtype(out_dtype).itemsize
    elems = n_rows * feat
    ops_per_elem = 2
    if standardize:
        ops_per_elem += 4
    if proportion:
        ops_per_elem += 2
    if normalize:
        ops_per_elem += 2
    if clr:
        ops_per_elem += 3
    uses_log = clr or (log_transform and not proportion)
    cost = pl.CostEstimate(
        flops=ops_per_elem * elems,
        transcendentals=elems if uses_log else 0,
        bytes_accessed=elems * (in_itemsize + out_itemsize) + (8 if need_minmax else 0),
    )

    # NOTE: input_output_aliases={0: 0} would save an HBM allocation when the caller
    # donates X and out_dtype == orig_dtype, but donation changes caller semantics,
    # so it is intentionally not applied here.
    out = pl.pallas_call(
        kernel,
        out_shape=jax.ShapeDtypeStruct((n_rows, feat), out_dtype),
        grid=grid,
        in_specs=in_specs,
        out_specs=pl.BlockSpec((row_tile, feat), lambda i: (i, 0)),
        compiler_params=pltpu.CompilerParams(
            dimension_semantics=("parallel",),   # rows independent -> both TCs on v7x
            vmem_limit_bytes=32 * 1024 * 1024,
        ),
        cost_estimate=cost,
    )(*args)

    return out.reshape(orig_shape)


class CountsPreprocessing:
    """Mirrors the nn.Module interface: flags fixed at construction time."""

    def __init__(self, preprocessing):
        if preprocessing is None:
            preprocessing = []
        self.log_transform = 'log' in preprocessing
        self.standardize = 'standardize' in preprocessing
        self.normalize = 'normalize' in preprocessing
        self.proportion = 'proportion' in preprocessing
        self.clr = 'clr' in preprocessing

    def __call__(self, X):
        return counts_preprocessing(
            X,
            clr=self.clr,
            proportion=self.proportion,
            log_transform=self.log_transform,
            standardize=self.standardize,
            normalize=self.normalize,
        )


def counts_preprocessing_ref(X, preprocessing):
    """Pure-JAX reference replicating the PyTorch forward exactly."""
    if preprocessing is None:
        preprocessing = []
    log_transform = 'log' in preprocessing
    standardize = 'standardize' in preprocessing
    normalize = 'normalize' in preprocessing
    proportion = 'proportion' in preprocessing
    clr = 'clr' in preprocessing

    x = X
    if clr:
        log_x = jnp.log(x + 1e-32)
        return log_x - jnp.mean(log_x, axis=-1, keepdims=True)
    if proportion:
        x = x / (jnp.sum(x, axis=-1, keepdims=True) + 1e-32)
    if log_transform and (not proportion):
        x = jnp.log(X + 1e-32)
    if standardize and (not proportion):
        x = (x - jnp.mean(x, axis=-1, keepdims=True)) / (
            jnp.std(x, axis=-1, keepdims=True, ddof=1) + 1e-32)
    if normalize and (not proportion):
        x_max = jnp.max(X)
        x_min = jnp.min(X)
        x = (x - x_min) / (x_max - x_min)
    return x


if __name__ == "__main__":
    # Deterministic synthetic "counts" (strictly positive so log is well-behaved).
    key = jax.random.PRNGKey(0)
    k1, k2 = jax.random.split(key)
    B, G, D = 4, 8, 128   # batch, groups, taxa  (last dim lane-dense: 128)
    X = jax.random.uniform(k1, (B, G, D), dtype=jnp.float32,
                           minval=0.1, maxval=100.0)

    configs = [
        None,
        ['proportion'],
        ['clr'],
        ['log', 'standardize', 'normalize'],
    ]

    for prep in configs:
        module = CountsPreprocessing(prep)
        out = jax.block_until_ready(module(X))
        ref = counts_preprocessing_ref(X, prep)
        assert out.shape == X.shape, (prep, out.shape)
        assert jnp.allclose(out, ref, atol=1e-5, rtol=1e-5), \
            f"mismatch vs reference for preprocessing={prep}"

    # Integer counts: output must be float-promoted (like torch), not truncated.
    X_int = jax.random.randint(k2, (B, G, D), 1, 1000, dtype=jnp.int32)
    module = CountsPreprocessing(['clr'])
    out_i = jax.block_until_ready(module(X_int))
    ref_i = counts_preprocessing_ref(X_int.astype(jnp.float32), ['clr'])
    assert out_i.dtype == jnp.float32, out_i.dtype
    assert jnp.allclose(out_i, ref_i, atol=1e-5, rtol=1e-5), \
        "mismatch vs reference for integer clr"

    print("KERNEL_OK")
</pallas_src>

<mosaic_0001>
module attributes {stable_mosaic.version = 11 : i64} {
  func.func @_counts_kernel(%arg0: i32, %arg1: memref<8x128xf32, #tpu.memory_space<vmem>>, %arg2: memref<8x128xf32, #tpu.memory_space<vmem>>) attributes {dimension_semantics = [#tpu.dimension_semantics<parallel>], iteration_bounds = array<i64: 4>, scalar_prefetch = 0 : i64, scratch_operands = 0 : i64, tpu.core_type = #tpu.core_type<tc>, window_params = [{transform_indices = @transform_0, window_bounds = array<i64: 8, 128>}, {transform_indices = @transform_1, window_bounds = array<i64: 8, 128>}]} {
    %c0 = arith.constant 0 : index
    %c0_0 = arith.constant 0 : index
    %0 = vector.load %arg1[%c0, %c0_0] : memref<8x128xf32, #tpu.memory_space<vmem>>, vector<8x128xf32>
    %c0_1 = arith.constant 0 : index
    %c0_2 = arith.constant 0 : index
    %1 = vector.load %arg2[%c0_1, %c0_2] : memref<8x128xf32, #tpu.memory_space<vmem>>, vector<8x128xf32>
    tpu.vector_store %arg2[%c0_1, %c0_2], %0 {strides = array<i32>} : memref<8x128xf32, #tpu.memory_space<vmem>>, vector<8x128xf32>,
    return
  }
  func.func @transform_0(%arg0: i32) -> (i32, i32) {
    %c0_i32 = arith.constant 0 : i32
    %c0_i32_0 = arith.constant 0 : i32
    return %arg0, %c0_i32 : i32, i32
  }
  func.func @transform_1(%arg0: i32) -> (i32, i32) {
    %c0_i32 = arith.constant 0 : i32
    %c0_i32_0 = arith.constant 0 : i32
    return %arg0, %c0_i32 : i32, i32
  }
}

</mosaic_0001>

<bundles_post_ra>
// kernel: counts_preprocessing.1
= control target key start
LH: loop header
LB: loop body
LE: loop exit
PB: predicated region body
PF: predicated region fallthrough
CT: control target
= control target key end

     0   :  { %6 = vsyncpa [#allocation3], 0  ;;  %s513_s0 = inlined_call_operand.hbm [shape: f32[32,128], index: 0, kind: input, shape index: {}]   ;;  %s514_s1 = inlined_call_operand.hbm [shape: f32[32,128], index: 1, kind: output, shape index: {}]  }
   0x1   :  { %8 = vsyncpa [#allocation3 + $0x1], 0 }
   0x2   :  { %9 = vsyncpa [#allocation4], 0 }
   0x3   :  { %11 = vsyncpa [#allocation4 + $0x1], 0  ;;  %s388_s6 = smov 0   ;;  %s390_s7 = smov 0  }
   0x4   :  { %s392_s8 = smov 0   ;;  %s394_s9 = smov 0  }
   0x5 LB: > { %s409_s10 = sadd.s32 4294967295, %s376_s9   ;;  %s222_s11 = sadd.s32 4294967294, %s376_s9   ;;  %s376_s9 = sphi %s394_s9, %s523_s9   ;;  %s372_s8 = sphi %s392_s8, %s522_s8   ;;  %s368_s7 = sphi %s390_s7, %s521_s7   ;;  %s364_s6 = sphi %s388_s6, %s520_s6  }
   0x6   : > { %s413_s12 = sadd.s32 1, %s376_s9   ;;  %s24_s13 = sadd.s32 1, %s372_s8 }
   0x7   : > { %s21_s14 = ssub.s32 %s376_s9, %s413_s12  ;;  %p31_p0 = scmp.ne.s32.totalorder %s372_s8, %s368_s7 }
   0x8   : > { %p22_p1 = scmp.eq.s32.totalorder %s21_s14, 0  ;;  %p32_p2 = scmp.eq.s32.totalorder %s376_s9, 0 }
   0x9   : > { %p37_p3 = scmp.ne.s32.totalorder %s368_s7, %s364_s6  ;;  %p38_p4 = scmp.eq.s32.totalorder %s409_s10, 0 }
   0xa   : > { %s425_s15 = scalar_select %p22_p1, %s372_s8, %s24_s13  }
   0xb   : > { %p427_p5 = por %p32_p2, %p31_p0  ;;  %p431_p6 = por %p38_p4, %p37_p3 }
   0xc   : > { %p61_p7 = scmp.eq.s32.totalorder %s409_s10, 3  ;;  %p67_p8 = scmp.eq.s32.totalorder %s222_s11, 3 }
   0xd   : > { %p246_p9 = scmp.lt.s32.totalorder %s376_s9, 4  ;;  %s87_s20 = sand.u32 1, %s372_s8  }
   0xe   : > { %p437_p10 = por %p61_p7, %p31_p0  ;;  %p441_p11 = por %p67_p8, %p37_p3 }
   0xf   : > { %s226_s21 = sshll.u32 %s376_s9, 3  ;;  %s225_s22 = sshll.u32 %s87_s20, 3 }
  0x10   : > { %s95_s25 = scalar_lea.hbm %s513_s0, %s226_s21  ;;  %s91_s27 = scalar_lea.vmem [#allocation2], %s225_s22 }
  0x11   : > { %s97_s26 = sshll.u32 %s95_s25, 4  ;;  %s99_s28 = sshll.u32 %s91_s27, 4  ;;  %s98_s26 = int_to_ptr.hbm [resolvable:$true] %s97_s26  ;;  %s100_s28 = int_to_ptr.vmem [resolvable:$true] %s99_s28 }
  0x12   : > { %p452_p12 = pnand %p246_p9, %p427_p5  ;;  %p227_p13 = scmp.ge.s32.totalorder %s376_s9, 1 }
  0x13   : > { %p104_p0 = scmp.lt.s32.totalorder %s376_s9, 5  ;;  %s88_s30 = scalar_lea.sflag [#allocation3], %s87_s20 }
  0x14   : > { %s280_s2 = sshra.s32 %s98_s26, 4  ;;  %p284_p2 = pneg %p452_p12  ;;  %s281_s2 = int_to_ptr.hbm [resolvable:$true] %s280_s2 }
  0x15   : > { %s282_s3 = scalar_lea.hbm %s281_s2, 8  ;;  %s287_s11 = scalar_lea.hbm %s513_s0, 32 }
  0x16   : > { %p283_p1 = scmp.ne.s32.totalorder %s281_s2, %s282_s3  ;;  %p288_p5 = scmp.lt.s32.totalorder %s281_s2, %s513_s0 }
  0x17   : > { %p289_p7 = scmp.lt.s32.totalorder %s287_s11, %s282_s3 }
  0x18   : > { %p285_p3 = pnand %p284_p2, %p283_p1 }
  0x19   : > { %p290_p8 = por %p289_p7, %p288_p5 }
  0x1a   : > { %p286_p4 = pneg %p285_p3 }
  0x1c   : > { %p291_p9 = pnand %p290_p8, %p286_p4 }
  0x1e   : > { %294 = shalt.err (!%p291_p9)
}
  0x1f   : > { %241 = dma.hbm_to_vmem [thread:$0]  (!%p452_p12), %s98_s26, 128, %s100_s28, %s88_s30  }
  0x20   : > { %p105_p1 = pnand %p227_p13, %p104_p0 }
  0x21   : > { %s473_s16 = sand.u32 (!%p105_p1), 1, %s368_s7  }
  0x22   : > { %108 = sbr.rel (%p105_p1) target bundleno = 55 (0x37), region = 24  ;;  %s228_s20 = sshll.u32 (!%p105_p1), %s473_s16, 3 }
  0x23   : > { %s111_s21 = scalar_lea.sflag (!%p105_p1), [#allocation3], %s473_s16  ;;  %s114_s22 = scalar_lea.vmem (!%p105_p1), [#allocation2], %s228_s20 }
  0x27   : > { %355 = dma.done.wait (%p431_p6), %s111_s21, 128  }
  0x28   : > { %357 = vsyncadd (%p431_p6), %s111_s21, 4294967168  ;;  %s231_s23 = sshll.u32 %s409_s10, 3  ;;  %s133_s27 = scalar_lea.vmem [#allocation5], %s228_s20  ;;  %v134_v0 = vld [vmem:[%s114_s22] sm:$0xff] }
  0x29   : > { %s147_s26 = scalar_lea.hbm %s514_s1, %s231_s23  ;;  %s149_s28 = sshll.u32 %s133_s27, 4  ;;  %135 = vst [vmem:[%s133_s27] sm:$0xff] %v134_v0  ;;  %s150_s28 = int_to_ptr.vmem [resolvable:$true] %s149_s28 }
  0x2a   : > { %s151_s29 = sshll.u32 %s147_s26, 4  ;;  %s137_s30 = scalar_lea.sflag [#allocation4], %s473_s16  ;;  %s152_s29 = int_to_ptr.hbm [resolvable:$true] %s151_s29 }
  0x2b   : > { %s324_s2 = sshra.s32 %s152_s29, 4  ;;  %s330_s4 = scalar_lea.hbm %s514_s1, 32  ;;  %s325_s2 = int_to_ptr.hbm [resolvable:$true] %s324_s2 }
  0x2c   : > { %s326_s17 = scalar_lea.hbm %s325_s2, 8  ;;  %p331_p0 = scmp.lt.s32.totalorder %s325_s2, %s514_s1 }
  0x2d   : > { %p327_p6 = scmp.ne.s32.totalorder %s325_s2, %s326_s17  ;;  %p332_p2 = scmp.lt.s32.totalorder %s330_s4, %s326_s17 }
  0x2f   : > { %p328_p12 = pnand %p327_p6, %p437_p10  ;;  %p333_p3 = por %p332_p2, %p331_p0 }
  0x31   : > { %p329_p13 = pneg %p328_p12 }
  0x33   : > { %p334_p4 = pnand %p333_p3, %p329_p13 }
  0x35   : > { %337 = shalt.err (!%p334_p4)
}
  0x36   : > { %236 = dma.vmem_to_hbm [thread:$0]  (%p437_p10), %s150_s28, 128, %s152_s29, %s137_s30  }
  0x37 PF: > { %p247_p5 = scmp.ge.s32.totalorder %s376_s9, 2  ;;  %s163_s13 = sand.u32 1, %s364_s6  }
  0x38   : > { %s164_s14 = scalar_lea.sflag [#allocation4], %s163_s13 }
  0x39   : > { %p243_p7 = pnand %p247_p5, %p441_p11 }
  0x3b   : > { %p244_p8 = pneg %p243_p7 }
  0x3d   : > { %359 = dma.done.wait (%p244_p8), %s164_s14, 128  }
  0x3e   : > { %361 = vsyncadd (%p244_p8), %s164_s14, 4294967168  ;;  %p14_p9 = scmp.ge.s32.totalorder %s413_s12, 6   ;;  %s520_s6 = smov %s368_s7 }
  0x3f   : > { %s521_s7 = smov %s372_s8  ;;  %s522_s8 = smov %s425_s15 }
  0x40   : > { %s523_s9 = smov %s413_s12  ;;  %16 = sbr.rel (!%p14_p9) target bundleno = 5 (0x5), region = 69 }
  0x45   :  { %170 = vsyncpa [#allocation3], 1 }
  0x46   :  { %172 = vsyncpa [#allocation3 + $0x1], 1 }
  0x47   :  { %173 = vsyncpa [#allocation4], 1 }
  0x48   :  { %175 = vsyncpa [#allocation4 + $0x1], 1 }

</bundles_post_ra>
